<compile_context>
chip_gen: v7x
topology: tpu7x:2x2x1
jax: 0.10.0
libtpu: 0.0.40
codegen_flags: <defaults>
</compile_context>

<pallas_src>
import functools

import numpy as np
import jax
import jax.numpy as jnp
from jax.experimental import pallas as pl
from jax.experimental.pallas import tpu as pltpu


# ---------------------------------------------------------------------------
# Host-side helpers
# ---------------------------------------------------------------------------

def _bilinear_weights_np(out_size: int, in_size: int) -> np.ndarray:
    """(out_size, in_size) align_corners=True bilinear weights (float64)."""
    if out_size == 1:
        src = np.zeros((1,), dtype=np.float64)
    else:
        src = np.arange(out_size, dtype=np.float64) * ((in_size - 1) / (out_size - 1))
    i0 = np.clip(np.floor(src).astype(np.int64), 0, in_size - 1)
    i1 = np.minimum(i0 + 1, in_size - 1)
    frac = src - i0
    w = np.zeros((out_size, in_size), dtype=np.float64)
    w[np.arange(out_size), i0] += 1.0 - frac
    w[np.arange(out_size), i1] += frac
    return w


def _vmem_capacity_bytes() -> int:
    try:
        return int(pltpu.get_tpu_info().vmem_capacity_bytes)
    except Exception:
        return 128 * 2 ** 20


def _vmem_limit(est_bytes: int, vmem_cap: int) -> int:
    # Never request more than ~3/4 of physical VMEM (48 MiB on v7x, 96 MiB on
    # 128 MiB parts); always leave headroom above the working-set estimate.
    return int(min(max(est_bytes + (4 << 20), 16 << 20), int(0.75 * vmem_cap)))


def _choose_kron_group(bc, est_fn, budget, sublane_mult):
    # Block sublane dim must be a multiple of the dtype's sublane packing or
    # cover the whole array; prefer >=2 grid steps (v7x dual-TC sharding).
    cands = sorted(g for g in range(1, bc + 1)
                   if bc % g == 0 and (g == bc or g % sublane_mult == 0))
    fitting = [g for g in cands if est_fn(g) <= budget]
    if fitting:
        split = [g for g in fitting if bc // g >= 2]
        if split:
            return max(split)
        return max(fitting)
    return cands[0]        # smallest legal block if nothing fits the budget


def _choose_sep_tiles(bc, win, est_fn, budget):
    # Leading group dim of a 3-D block is unconstrained -> any divisor of BC.
    tw_cands = sorted({win} | {t for t in range(128, win, 128) if win % t == 0},
                      reverse=True)
    g_desc = sorted((g for g in range(1, bc + 1) if bc % g == 0), reverse=True)
    ordered = [g for g in g_desc if bc // g >= 2] + [g for g in g_desc if bc // g == 1]
    for g in ordered:
        for tw in tw_cands:
            if est_fn(g, tw) <= budget:
                return g, tw
    return 1, tw_cands[-1]


# ---------------------------------------------------------------------------
# Kernels
# ---------------------------------------------------------------------------

def _kron_kernel(wkt_ref, x_ref, o_ref, *, scale, offset, signed_fix):
    # wkt_ref: (Hin*Win, Hout*Wout)  (wh kron ww)^T   -- constant block
    # x_ref  : (G, Hin*Win)          G channel slices, narrow dtype
    # o_ref  : (G, Hout*Wout)        lane-dense output tile
    xf = x_ref[...].astype(jnp.float32)
    if signed_fix:                       # uint8 viewed as int8 -> undo bias
        xf = jnp.where(xf < 0.0, xf + 256.0, xf)
    res = jnp.dot(xf, wkt_ref[...], preferred_element_type=jnp.float32)
    o_ref[...] = (res * scale + offset).astype(o_ref.dtype)


def _separable_kernel(wh_ref, wwt_ref, x_ref, o_ref, acc_ref,
                      *, scale, offset, signed_fix):
    # wh_ref : (Hout, Hin)          height weights (constant block)
    # wwt_ref: (TW, Wout)           width-weight tile of the reduction axis
    # x_ref  : (G, Hin, TW)         input tile
    # o_ref  : (G, Hout, Wout)      revolving output block (same across k)
    # acc_ref: (G, Hin, Wout) f32   width-pass accumulator
    k = pl.program_id(1)

    @pl.when(k == 0)
    def _():
        acc_ref[...] = jnp.zeros_like(acc_ref)

    g, hin, tw = x_ref.shape
    xf = x_ref[...].astype(jnp.float32)
    if signed_fix:
        xf = jnp.where(xf < 0.0, xf + 256.0, xf)
    # Width pass: M = G*Hin rows on the MXU, accumulated over Win tiles.
    part = jnp.dot(xf.reshape(g * hin, tw), wwt_ref[...],
                   preferred_element_type=jnp.float32)            # (G*Hin, Wout)
    acc_ref[...] += part.reshape(g, hin, -1)

    @pl.when(k == pl.num_programs(1) - 1)
    def _():
        wh = wh_ref[...]                                          # (Hout, Hin)
        whb = jnp.broadcast_to(wh[None], (g,) + wh.shape)         # (G, Hout, Hin)
        res = jnp.einsum("goh,ghw->gow", whb, acc_ref[...],
                         preferred_element_type=jnp.float32)      # (G, Hout, Wout)
        o_ref[...] = (res * scale + offset).astype(o_ref.dtype)


# ---------------------------------------------------------------------------
# Wrapper
# ---------------------------------------------------------------------------

def preprocessor_forward(x, input_size=(8, 8), map2negone=True, bgr_to_rgb=True,
                         out_dtype=jnp.float32, force_separable=False):
    """Pallas equivalent of Preprocessor.forward on a stacked NCHW batch.

    dtype contract: uint8 inputs are byte images (values 0..255); any other
    dtype is cast to f32 on-chip at full precision.
    """
    if not isinstance(input_size, tuple):
        input_size = (input_size, input_size)
    B, C, Hin, Win = x.shape
    Hout, Wout = input_size
    BC = B * C

    signed_fix = False
    if x.dtype == jnp.uint8:
        # Free same-width view; the kernel reads 1 byte/pixel and undoes the
        # two's-complement bias on-chip (one select).
        x = jax.lax.bitcast_convert_type(x, jnp.int8)
        signed_fix = True

    # /255 then (*2 - 1) folded into one fused multiply-add inside the kernel.
    scale = (2.0 / 255.0) if map2negone else (1.0 / 255.0)
    offset = -1.0 if map2negone else 0.0
    flip = bool(bgr_to_rgb and C == 3)

    wh_np = _bilinear_weights_np(Hout, Hin)     # (Hout, Hin) float64
    ww_np = _bilinear_weights_np(Wout, Win)     # (Wout, Win) float64

    in_itemsize = jnp.dtype(x.dtype).itemsize
    out_itemsize = jnp.dtype(out_dtype).itemsize
    sub_in = 8 * max(1, 4 // in_itemsize)       # sublane multiple for input dtype

    vmem_cap = _vmem_capacity_bytes()
    budget = int(0.60 * vmem_cap)               # per-step working-set budget

    K = Hin * Win                               # flattened source pixels
    No = Hout * Wout                            # flattened target pixels
    kron_wbytes = K * No * 4
    use_kron = (not force_separable) and kron_wbytes <= (4 << 20)

    if use_kron:
        # ---- single-matmul path: x.reshape(BC, Hin*Win) @ (wh kron ww)^T ----
        wkt = jnp.asarray(np.kron(wh_np, ww_np).T, dtype=jnp.float32)   # (K, No)

        def est(g):
            return (2 * g * K * in_itemsize          # input blocks (dbl-buffered)
                    + 2 * g * No * out_itemsize      # output blocks
                    + 2 * kron_wbytes                # weight block
                    + g * K * 4 + g * No * 4         # f32 cast + matmul result
                    + (1 << 20))

        G = _choose_kron_group(BC, est, budget, sub_in)
        NG = BC // G

        kernel = functools.partial(_kron_kernel, scale=scale, offset=offset,
                                   signed_fix=signed_fix)
        out_flat = pl.pallas_call(
            kernel,
            out_shape=jax.ShapeDtypeStruct((BC, No), out_dtype),
            grid_spec=pltpu.PrefetchScalarGridSpec(
                num_scalar_prefetch=0,
                grid=(NG,),
                in_specs=[
                    pl.BlockSpec((K, No), lambda i: (0, 0)),    # (wh kron ww)^T
                    pl.BlockSpec((G, K), lambda i: (i, 0)),     # G channel slices
                ],
                out_specs=pl.BlockSpec((G, No), lambda i: (i, 0)),
            ),
            compiler_params=pltpu.CompilerParams(
                dimension_semantics=("parallel",),
                vmem_limit_bytes=_vmem_limit(est(G), vmem_cap),
            ),
        )(wkt, x.reshape(BC, K))
        out = out_flat.reshape(B, C, Hout, Wout)
    else:
        # ---- separable fallback for large frames: width pass tiled over Win
        #      (reduction axis), height pass applied at finalize. -------------
        wh = jnp.asarray(wh_np, dtype=jnp.float32)       # (Hout, Hin)
        wwt = jnp.asarray(ww_np.T, dtype=jnp.float32)    # (Win, Wout)

        def est(g, tw):
            return (2 * g * Hin * tw * in_itemsize
                    + 2 * g * Hout * Wout * out_itemsize
                    + 2 * (Hout * Hin + tw * Wout) * 4
                    + g * Hin * Wout * 4                 # accumulator scratch
                    + g * Hin * tw * 4                   # f32 cast of the x tile
                    + g * Hin * Wout * 4                 # width-pass partial
                    + g * Hout * Hin * 4                 # broadcast height weights
                    + (2 << 20))

        G, TW = _choose_sep_tiles(BC, Win, est, budget)
        NG, NK = BC // G, Win // TW

        kernel = functools.partial(_separable_kernel, scale=scale, offset=offset,
                                   signed_fix=signed_fix)
        out3 = pl.pallas_call(
            kernel,
            out_shape=jax.ShapeDtypeStruct((BC, Hout, Wout), out_dtype),
            grid_spec=pltpu.PrefetchScalarGridSpec(
                num_scalar_prefetch=0,
                grid=(NG, NK),
                in_specs=[
                    pl.BlockSpec((Hout, Hin), lambda i, k: (0, 0)),     # wh
                    pl.BlockSpec((TW, Wout), lambda i, k: (k, 0)),      # ww^T tile
                    pl.BlockSpec((G, Hin, TW), lambda i, k: (i, 0, k)),
                ],
                out_specs=pl.BlockSpec((G, Hout, Wout), lambda i, k: (i, 0, 0)),
                scratch_shapes=[pltpu.VMEM((G, Hin, Wout), jnp.float32)],
            ),
            compiler_params=pltpu.CompilerParams(
                dimension_semantics=("parallel", "arbitrary"),
                vmem_limit_bytes=_vmem_limit(est(G, TW), vmem_cap),
            ),
        )(wh, wwt, x.reshape(BC, Hin, Win))
        out = out3.reshape(B, C, Hout, Wout)
        # TODO(synk): for extreme Hin where even a single (Hin, 128) column
        # slice overflows VMEM, also tile Hin rows with a second reduction axis.

    if flip:
        # BGR -> RGB on the small resized output; equivalent to flipping the
        # input because the resize is channel-independent.
        # TODO(synk): fold the flip into the BlockSpec index_map for configs
        # where Hout*Wout is large.
        out = out[:, ::-1]
    return out


# ---------------------------------------------------------------------------
# Pure-JAX reference & test
# ---------------------------------------------------------------------------

def _reference(x, input_size, map2negone=True, bgr_to_rgb=True):
    """Gather-based align_corners=True bilinear reference."""
    if bgr_to_rgb and x.shape[1] == 3:
        x = x[:, ::-1]
    x = x.astype(jnp.float32)
    B, C, Hin, Win = x.shape
    Hout, Wout = input_size
    ys = jnp.arange(Hout, dtype=jnp.float32) * ((Hin - 1) / max(Hout - 1, 1))
    xs = jnp.arange(Wout, dtype=jnp.float32) * ((Win - 1) / max(Wout - 1, 1))
    y0 = jnp.floor(ys).astype(jnp.int32)
    y1 = jnp.minimum(y0 + 1, Hin - 1)
    wy = (ys - y0.astype(jnp.float32))[:, None]
    x0 = jnp.floor(xs).astype(jnp.int32)
    x1 = jnp.minimum(x0 + 1, Win - 1)
    wx = xs - x0.astype(jnp.float32)
    r0 = x[:, :, y0, :]
    r1 = x[:, :, y1, :]
    top = r0[..., x0] * (1 - wx) + r0[..., x1] * wx
    bot = r1[..., x0] * (1 - wx) + r1[..., x1] * wx
    out = top * (1 - wy) + bot * wy
    out = out / 255.0
    if map2negone:
        out = out * 2.0 - 1.0
    return out


if __name__ == "__main__":
    key = jax.random.PRNGKey(0)
    B, C, Hin, Win = 2, 3, 16, 16
    input_size = (8, 8)

    # Byte images in HBM (BGR, per the module's convention).
    x_int = jax.random.randint(key, (B, C, Hin, Win), 0, 256, dtype=jnp.int32)
    x = x_int.astype(jnp.uint8)

    out = preprocessor_forward(x, input_size=input_size,
                               map2negone=True, bgr_to_rgb=True)
    out = jax.block_until_ready(out)

    # Also exercise the separable (large-frame) fallback path.
    out_sep = preprocessor_forward(x, input_size=input_size, map2negone=True,
                                   bgr_to_rgb=True, force_separable=True)
    out_sep = jax.block_until_ready(out_sep)

    ref = _reference(x_int.astype(jnp.float32), input_size,
                     map2negone=True, bgr_to_rgb=True)
    np.testing.assert_allclose(np.asarray(out), np.asarray(ref),
                               rtol=1e-5, atol=3e-5)
    np.testing.assert_allclose(np.asarray(out_sep), np.asarray(ref),
                               rtol=1e-5, atol=3e-5)

    # TODO(synk): BaseAuxiliary.forward itself is abstract (NotImplementedError);
    # only its concrete Preprocessor component has computable semantics.
    print("KERNEL_OK")
</pallas_src>

<mosaic_0001>
module attributes {stable_mosaic.version = 11 : i64} {
  func.func @_kron_kernel(%arg0: i32, %arg1: memref<256x64xf32, #tpu.memory_space<vmem>>, %arg2: memref<6x256xi8, #tpu.memory_space<vmem>>, %arg3: memref<6x64xf32, #tpu.memory_space<vmem>>) attributes {dimension_semantics = [#tpu.dimension_semantics<parallel>], iteration_bounds = array<i64: 1>, scalar_prefetch = 0 : i64, scratch_operands = 0 : i64, tpu.core_type = #tpu.core_type<tc>, window_params = [{pipeline_mode = #tpu.pipeline_mode<synchronous>, transform_indices = @transform_0, window_bounds = array<i64: 256, 64>}, {transform_indices = @transform_1, window_bounds = array<i64: 6, 256>}, {transform_indices = @transform_2, window_bounds = array<i64: 6, 64>}]} {
    %c0 = arith.constant 0 : index
    %c0_0 = arith.constant 0 : index
    %0 = vector.load %arg2[%c0, %c0_0] : memref<6x256xi8, #tpu.memory_space<vmem>>, vector<6x256xi8>
    %1 = arith.sitofp %0 : vector<6x256xi8> to vector<6x256xf32>
    %cst = arith.constant 0.000000e+00 : f32
    %2 = vector.broadcast %cst : f32 to vector<6x256xf32>
    %3 = arith.cmpf olt, %1, %2 : vector<6x256xf32>
    %cst_1 = arith.constant 2.560000e+02 : f32
    %4 = vector.broadcast %cst_1 : f32 to vector<6x256xf32>
    %5 = arith.addf %1, %4 : vector<6x256xf32>
    %6 = arith.select %3, %5, %1 : vector<6x256xi1>, vector<6x256xf32>
    %c0_2 = arith.constant 0 : index
    %c0_3 = arith.constant 0 : index
    %7 = vector.load %arg1[%c0_2, %c0_3] : memref<256x64xf32, #tpu.memory_space<vmem>>, vector<256x64xf32>
    %cst_4 = arith.constant dense<0.000000e+00> : vector<6x64xf32>
    %8 = tpu.matmul %6, %7, %cst_4 {dimension_numbers = #tpu.dot_dimension_numbers<[1], [0], [0], [1], [0, 0, 1, 1], [], []>} : vector<6x256xf32>, vector<256x64xf32>, vector<6x64xf32> -> vector<6x64xf32>
    %cst_5 = arith.constant 0.00784313772 : f32
    %9 = vector.broadcast %cst_5 : f32 to vector<6x64xf32>
    %10 = arith.mulf %8, %9 : vector<6x64xf32>
    %cst_6 = arith.constant -1.000000e+00 : f32
    %11 = vector.broadcast %cst_6 : f32 to vector<6x64xf32>
    %12 = arith.addf %10, %11 : vector<6x64xf32>
    %c0_7 = arith.constant 0 : index
    %c0_8 = arith.constant 0 : index
    %13 = vector.load %arg3[%c0_7, %c0_8] : memref<6x64xf32, #tpu.memory_space<vmem>>, vector<6x64xf32>
    tpu.vector_store %arg3[%c0_7, %c0_8], %12 {strides = array<i32>} : memref<6x64xf32, #tpu.memory_space<vmem>>, vector<6x64xf32>,
    return
  }
  func.func @transform_0(%arg0: i32) -> (i32, i32) {
    %c0_i32 = arith.constant 0 : i32
    %c0_i32_0 = arith.constant 0 : i32
    %c0_i32_1 = arith.constant 0 : i32
    return %c0_i32, %c0_i32_0 : i32, i32
  }
  func.func @transform_1(%arg0: i32) -> (i32, i32) {
    %c0_i32 = arith.constant 0 : i32
    %c0_i32_0 = arith.constant 0 : i32
    return %arg0, %c0_i32 : i32, i32
  }
  func.func @transform_2(%arg0: i32) -> (i32, i32) {
    %c0_i32 = arith.constant 0 : i32
    %c0_i32_0 = arith.constant 0 : i32
    return %arg0, %c0_i32 : i32, i32
  }
}

</mosaic_0001>

<bundles_post_ra>
// kernel: tpu_custom_call.1
= control target key start
LH: loop header
LB: loop body
LE: loop exit
PB: predicated region body
PF: predicated region fallthrough
CT: control target
= control target key end

     0   :  { %s362_s0 = inlined_call_operand.vmem [shape: f32[256,64], index: 0, kind: input, shape index: {}]   ;;  %s363_s1 = inlined_call_operand.vmem [shape: s8[6,256], index: 1, kind: input, shape index: {}]   ;;  %s364_s2 = inlined_call_operand.hbm [shape: f32[6,64], index: 2, kind: output, shape index: {}]  }
   0x1   :  { %v39_v0 = vld [vmem:[%s362_s0 + $0x80] sm:$0xff]  ;;  %v40_v1 = vld [vmem:[%s362_s0 + $0x88] sm:$0xff]  ;;  %v41_v5 = vld [vmem:[%s362_s0 + $0x90] sm:$0xff] }
   0x2   :  { %v23_v2 = vld [vmem:[%s362_s0] sm:$0xff]  ;;  %v178_v3 = vpack.c.bf16 %v40_v1, %v39_v0  ;;  %v24_v4 = vld [vmem:[%s362_s0 + $0x8] sm:$0xff]  ;;  %v42_v6 = vld [vmem:[%s362_s0 + $0x98] sm:$0xff] }
   0x3   :  { %v180_v7 = vpack.c.bf16 %v24_v4, %v23_v2  ;;  %v182_v8 = vpack.c.bf16 %v42_v6, %v41_v5  ;;  %v25_v9 = vld [vmem:[%s362_s0 + $0x10] sm:$0xff]  ;;  %v26_v10 = vld [vmem:[%s362_s0 + $0x18] sm:$0xff]  ;;  %v43_v11 = vld [vmem:[%s362_s0 + $0xa0] sm:$0xff] }
   0x4   :  { %179 = vmatprep.subr.bf16.mxu0 %v178_v3  ;;  %v44_v12 = vld [vmem:[%s362_s0 + $0xa8] sm:$0xff]  ;;  %v184_v13 = vpack.c.bf16 %v26_v10, %v25_v9  ;;  %v27_v15 = vld [vmem:[%s362_s0 + $0x20] sm:$0xff]  ;;  %v45_v17 = vld [vmem:[%s362_s0 + $0xb0] sm:$0xff] }
   0x5   :  { %181 = vmatpush3.bf16.msra.mxu0 %v180_v7  ;;  %v186_v14 = vpack.c.bf16 %v44_v12, %v43_v11  ;;  %v28_v16 = vld [vmem:[%s362_s0 + $0x28] sm:$0xff]  ;;  %v46_v18 = vld [vmem:[%s362_s0 + $0xb8] sm:$0xff]  ;;  %v29_v21 = vld [vmem:[%s362_s0 + $0x30] sm:$0xff] }
   0x6   :  { %183 = vmatprep.subr.bf16.mxu0 %v182_v8  ;;  %v188_v19 = vpack.c.bf16 %v28_v16, %v27_v15  ;;  %v190_v20 = vpack.c.bf16 %v46_v18, %v45_v17  ;;  %v30_v22 = vld [vmem:[%s362_s0 + $0x38] sm:$0xff]  ;;  %v47_v23 = vld [vmem:[%s362_s0 + $0xc0] sm:$0xff]  ;;  %v48_v24 = vld [vmem:[%s362_s0 + $0xc8] sm:$0xff] }
   0x7   :  { %v12_v25 = vld [vmem:[%s363_s1] sm:$0xf] }
   0x8   :  { %v14_v26 = vunpack.c.1.s8 %v12_v25 }
   0x9   :  { %185 = vmatpush3.bf16.msra.mxu0 %v184_v13 }
   0xa   :  { %187 = vmatprep.subr.bf16.mxu0 %v186_v14 }
   0xb   :  { %7 = vsyncpa [#allocation3], 0  ;;  %v192_v27 = vpack.c.bf16 %v30_v22, %v29_v21  ;;  %v194_v28 = vpack.c.bf16 %v48_v24, %v47_v23  ;;  %v31_v29 = vld [vmem:[%s362_s0 + $0x40] sm:$0xff]  ;;  %v32_v30 = vld [vmem:[%s362_s0 + $0x48] sm:$0xff]  ;;  %v16_v31 = vcvt.s32.f32 %v14_v26  ;;  %v13_v43 = vunpack.c.0.s8 %v12_v25  ;;  %s235_s18 = smov [#allocation2]  }
   0xc   :  { %v49_v32 = vld [vmem:[%s362_s0 + $0xd0] sm:$0xff]  ;;  %v50_v33 = vld [vmem:[%s362_s0 + $0xd8] sm:$0xff]  ;;  %v196_v35 = vpack.c.bf16 %v32_v30, %v31_v29  ;;  %v51_v40 = vld [vmem:[%s362_s0 + $0xe0] sm:$0xff]  ;;  %s135_s19 = sshll.u32 %s235_s18, 4  ;;  %vm127_vm2 = vcmask 521216   ;;  %s136_s19 = int_to_ptr.vmem [resolvable:$true] %s135_s19 }
   0xd   :  { %189 = vmatpush3.bf16.msra.mxu0 %v188_v19  ;;  %vm18_vm0 = vcmp.lt.f32.partialorder %v16_v31, 0.0  ;;  %v20_v34 = vadd.f32 256.0, %v16_v31  ;;  %v198_v36 = vpack.c.bf16 %v50_v33, %v49_v32  ;;  %v33_v37 = vld [vmem:[%s362_s0 + $0x50] sm:$0xff]  ;;  %v34_v38 = vld [vmem:[%s362_s0 + $0x58] sm:$0xff]  ;;  %v52_v41 = vld [vmem:[%s362_s0 + $0xe8] sm:$0xff]  ;;  %v15_v50 = vcvt.s32.f32 %v13_v43  ;;  %s211_s20 = scalar_lea.vmem %s136_s19, 128  ;;  %p216_p1 = scmp.lt.s32.totalorder %s136_s19, %s136_s19 }
   0xe   :  { %191 = vmatprep.subr.bf16.mxu0 %v190_v20  ;;  %v200_v42 = vpack.c.bf16 %v34_v38, %v33_v37  ;;  %v202_v44 = vpack.c.bf16 %v52_v41, %v51_v40  ;;  %v35_v45 = vld [vmem:[%s362_s0 + $0x60] sm:$0xff]  ;;  %v36_v46 = vld [vmem:[%s362_s0 + $0x68] sm:$0xff]  ;;  %v53_v47 = vld [vmem:[%s362_s0 + $0xf0] sm:$0xff]  ;;  %p212_p0 = scmp.ne.s32.totalorder %s136_s19, %s211_s20  ;;  %p217_p2 = scmp.lt.s32.totalorder %s211_s20, %s211_s20 }
   0xf   :  { %v22_v39 = vsel %vm18_vm0, %v20_v34, %v16_v31  ;;  %v54_v48 = vld [vmem:[%s362_s0 + $0xf8] sm:$0xff]  ;;  %v204_v49 = vpack.c.bf16 %v36_v46, %v35_v45  ;;  %v37_v52 = vld [vmem:[%s362_s0 + $0x70] sm:$0xff]  ;;  %v19_v55 = vadd.f32 256.0, %v15_v50  ;;  %vm17_vm1 = vcmp.lt.f32.partialorder %v15_v50, 0.0 }
  0x10   :  { %119 = vmatprep.mubr.f32.mxu0 %v22_v39  ;;  %v206_v51 = vpack.c.bf16 %v54_v48, %v53_v47  ;;  %v38_v53 = vld [vmem:[%s362_s0 + $0x78] sm:$0xff]  ;;  %p218_p3 = por %p217_p2, %p216_p1 }
  0x11   :  { %193 = vmatpush3.bf16.msra.mxu0 %v192_v27  ;;  %v208_v54 = vpack.c.bf16 %v38_v53, %v37_v52  ;;  %v21_v56 = vsel %vm17_vm1, %v19_v55, %v15_v50 }
  0x12   :  { %195 = vmatprep.subr.bf16.mxu0 %v194_v28  ;;  %p219_p4 = pnand %p218_p3, %p212_p0 }
  0x15   :  { %197 = vmatpush3.bf16.msra.mxu0 %v196_v35 }
  0x16   :  { %199 = vmatprep.subr.bf16.mxu0 %v198_v36 }
  0x19   :  { %201 = vmatpush3.bf16.msra.mxu0 %v200_v42 }
  0x1a   :  { %203 = vmatprep.subr.bf16.mxu0 %v202_v44 }
  0x1d   :  { %205 = vmatpush3.bf16.msra.mxu0 %v204_v49 }
  0x1e   :  { %207 = vmatprep.subr.bf16.mxu0 %v206_v51 }
  0x21   :  { %209 = vmatpush3.bf16.msra.mxu0 %v208_v54 }
  0x24   :  { %120 = vmatmul.mubr.f32.vlgmr.msra.gmra.mrb[0].mxu0 %v21_v56 }
  0xf7   :  { %v175_v57 = vpop.f32.mrb[0].mxu0 }
  0xf8   :  { %v176_v58 = vpop.f32.mrb[1].mxu0 }
  0xf9   :  { %v177_v59 = vadd.f32 %v176_v58, %v175_v57 }
  0xfb   :  { %v125_v60 = vmul.f32 0.007843138, %v177_v59 }
  0xfd   :  { %v126_v61 = vadd.f32 -1.0, %v125_v60 }
  0xff   :  { %128 = vst.msk [vmem:[#allocation2] sm:$0x3f] %vm127_vm2, %v126_v61 }
 0x100   :  { %222 = shalt.err (!%p219_p4)
}
 0x101   :  { %s223_s22 = scalar_lea.hbm %s364_s2, 128 }
 0x102   :  { %p224_p5 = scmp.ne.s32.totalorder %s364_s2, %s223_s22  ;;  %p227_p6 = scmp.lt.u32.totalorder %s223_s22, %s364_s2 }
 0x104   :  { %p229_p7 = pnand %p227_p6, %p224_p5 }
 0x106   :  { %232 = shalt.err (!%p229_p7)
}
 0x107   :  { %138 = dma.vmem_to_hbm [thread:$0]  %s136_s19, 128, %s364_s2, [#allocation3]  }
 0x108   :  { %233 = dma.done.wait [#allocation3], 128  }
 0x109   :  { %234 = vsyncadd [#allocation3], 4294967168 }
 0x10a   :  { %142 = vsyncpa [#allocation3], 1 }

</bundles_post_ra>
